<compile_context>
chip_gen: v6e
topology: v6e:2x2x1
jax: 0.10.0
libtpu: 0.0.40
codegen_flags: <defaults>
</compile_context>

<pallas_src>
import jax
import jax.numpy as jnp
import numpy as np
from jax import lax
from jax.experimental import pallas as pl
from jax.experimental.pallas import tpu as pltpu

LEAKY_SLOPE = 0.01  # nn.LeakyReLU() default negative_slope

_CONTRACT_LAST = (((1,), (1,)), ((), ()))   # contract last dims of both operands (A @ B^T)
_CONTRACT_FIRST = (((0,), (0,)), ((), ()))  # contract first dims of both operands (A^T @ B)


def dot_role_kernel(h_ref, al_ref,
                    wh_ref, bh_ref,    # fused h-side weight  (L+N+D, H), (L+N+D, 1)
                    wa_ref, ba_ref,    # fused al-side weight (N+D, L),   (N+D, 1)
                    w2_ref, b2a_ref,   # msg_net layer 2      (A, N),     (A, 1) [= n_actions*b2]
                    out_ref):          # (A, Bt) transposed, lane-dense output
    f32 = jnp.float32
    h = h_ref[...].astype(f32)         # (Bt, H)
    al = al_ref[...].astype(f32)       # (A, L)
    A, L = al.shape
    N = w2_ref.shape[1]

    # ---- fused h-side projection, batch-on-lanes:  proj_h[f, b] = sum_k W[f,k] h[b,k] ----
    proj_h = lax.dot_general(wh_ref[...], h, _CONTRACT_LAST,
                             preferred_element_type=f32) + bh_ref[...]      # (L+N+D, Bt)
    role_key_t = proj_h[:L, :]          # (L, Bt)   q_fc(h)^T
    hb_t       = proj_h[L:L + N, :]     # (N, Bt)   msg hidden, h contribution (+ b1)
    key_t      = proj_h[L + N:, :]      # (D, Bt)   w_key(h)^T

    # ---- fused al-side projection (tiny): column per action ----
    proj_a = lax.dot_general(wa_ref[...], al, _CONTRACT_LAST,
                             preferred_element_type=f32) + ba_ref[...]      # (N+D, A)
    ap_t    = proj_a[:N, :]             # (N, A)  msg hidden, action-latent contribution
    query_t = proj_a[N:, :]             # (D, A)  w_query(al)^T, 1/sqrt(D) already folded in

    # ---- q[b,a] = <action_latent[a], role_key[b]>  ->  (A, Bt) ----
    q_t = jnp.dot(al, role_key_t, preferred_element_type=f32)               # (A, Bt)

    # ---- msg_net summed over the action (middle) axis BEFORE the final Linear.
    #      Unrolled loop over the A actions keeps everything in vregs (no 3-D spill). ----
    def leaky(x):
        return jnp.where(x > 0, x, LEAKY_SLOPE * x)

    hid0 = hb_t + ap_t[:, 0:1]                          # lane-broadcast of action-0 column
    hid_sum_t = leaky(hid0)                             # (N, Bt)
    for a in range(1, A):                               # A is small & static -> fully unrolled
        hid = hb_t + ap_t[:, a:a + 1]
        hid_sum_t = hid_sum_t + leaky(hid)
    msg_sum_t = (jnp.dot(w2_ref[...], hid_sum_t, preferred_element_type=f32)
                 + b2a_ref[...])                                            # (A, Bt)

    # ---- attention: alpha does not depend on the expanded middle index -> 2-D softmax ----
    logits_t = lax.dot_general(query_t, key_t, _CONTRACT_FIRST,
                               preferred_element_type=f32)                  # (A, Bt)
    m = jnp.max(logits_t, axis=0, keepdims=True)
    e = jnp.exp(logits_t - m)
    denom = jnp.sum(e, axis=0, keepdims=True)
    # approx=True reciprocal evaluated but kept exact to hold the 1e-4 parity gate.
    alpha_t = e * pl.reciprocal(denom, approx=False)                        # (A, Bt)

    # TODO(synk): test_mode thresholding (alpha[alpha < 0.25/n_actions] = 0) not implemented
    # (forward is exercised with test_mode=False).

    out_ref[...] = (q_t + alpha_t * msg_sum_t).astype(out_ref.dtype)        # (A, Bt)


def prepare_params(params, rnn_hidden_dim):
    """One-time host-side re-layout:
       * h-side weights (q_fc, msg_net[0] h-half, w_key) fused into one (L+N+D, H) matrix,
         biases into one (L+N+D, 1) column (b1 lives on the h side).
       * al-side weights (msg_net[0] al-half, w_query) fused into one (N+D, L) matrix with
         the 1/sqrt(attention_dim) scale folded into the query rows/bias.
       * n_actions * b2 precomputed as a column.
    Row-slice boundaries (L=16, L+N=48 / N=32) are multiples of 8 -> free sublane slices."""
    H = rnn_hidden_dim
    wq, bq = params["wq"], params["bq"]      # (L, H), (1, L)
    w1, b1 = params["w1"], params["b1"]      # (N, H+L), (1, N)
    w2, b2 = params["w2"], params["b2"]      # (A, N), (1, A)
    wk, bk = params["wk"], params["bk"]      # (D, H), (1, D)
    wqr, bqr = params["wqr"], params["bqr"]  # (D, L), (1, D)
    A = w2.shape[0]
    D = wk.shape[0]
    scale = jnp.float32(1.0 / np.sqrt(np.float32(D)))

    w1h = w1[:, :H]                          # (N, H)
    w1a = w1[:, H:]                          # (N, L)

    wh = jnp.concatenate([wq, w1h, wk], axis=0)                       # (L+N+D, H)
    bh = jnp.concatenate([bq, b1, bk], axis=1).T                      # (L+N+D, 1)
    wa = jnp.concatenate([w1a, wqr * scale], axis=0)                  # (N+D, L)
    ba = jnp.concatenate([jnp.zeros_like(b1), bqr * scale], axis=1).T  # (N+D, 1)
    return dict(wh=wh, bh=bh, wa=wa, ba=ba, w2=w2, b2a=(jnp.float32(A) * b2).T)


def _choose_blocking(batch, max_block_b=512):
    """Return (padded_batch, block_b).  Small batches use a single full-batch block
    (block dims == array dims -> always legal).  Larger batches are padded to a multiple
    of 128 and tiled with a multiple-of-128 block, capped at half the padded batch so the
    'parallel' grid has >=2 steps (keeps both v7x TensorCores busy)."""
    if batch <= 128 or batch <= min(128, max_block_b):
        return batch, batch
    bp = ((batch + 127) // 128) * 128
    cap = min(max_block_b, max(128, bp // 2))
    block = 128
    for cand in (1024, 512, 256, 128):
        if cand <= cap and bp % cand == 0:
            block = cand
            break
    return bp, block


def dot_role_forward(h, action_latent, prep, *, max_block_b=512):
    B, H = h.shape
    A, L = action_latent.shape
    N = prep["w2"].shape[1]
    D = prep["wh"].shape[0] - L - N
    F_h = prep["wh"].shape[0]
    F_a = prep["wa"].shape[0]

    bp, block_b = _choose_blocking(B, max_block_b)
    h_in = h if bp == B else jnp.pad(h, ((0, bp - B), (0, 0)))  # zero rows are numerically safe
    grid = (bp // block_b,)

    def resident(x):  # full array, same block every step -> stays VMEM-resident
        return pl.BlockSpec(x.shape, lambda i: (0,) * x.ndim)

    weights = (prep["wh"], prep["bh"], prep["wa"], prep["ba"], prep["w2"], prep["b2a"])

    in_specs = ([pl.BlockSpec((block_b, H), lambda i: (i, 0)),
                 resident(action_latent)]
                + [resident(w) for w in weights])
    out_spec = pl.BlockSpec((A, block_b), lambda i: (0, i))

    flops = int(2 * bp * (H * F_h + A * (L + N + D))   # fused h matmul + 3 small matmuls
                + 2 * A * L * F_a                      # fused al matmul
                + 4 * bp * A * N                       # unrolled leaky accumulation
                + 12 * bp * A)                         # softmax / gating elementwise
    bytes_accessed = int(4 * (h_in.size + action_latent.size + A * bp
                              + sum(int(w.size) for w in weights)))
    cost = pl.CostEstimate(flops=flops,
                           transcendentals=int(A * bp + bp),
                           bytes_accessed=bytes_accessed)

    out_t = pl.pallas_call(
        dot_role_kernel,
        out_shape=jax.ShapeDtypeStruct((A, bp), jnp.float32),
        grid=grid,
        in_specs=in_specs,
        out_specs=out_spec,
        compiler_params=pltpu.CompilerParams(dimension_semantics=("parallel",)),
        cost_estimate=cost,
    )(h_in, action_latent, *weights)

    # Module semantics return (B, A).  A consumer that accepts (A, B) should take out_t
    # directly and skip this extra HBM round trip.
    return out_t[:, :B].T


def make_params(key, rnn_hidden_dim, latent_dim, nn_hidden_size, n_actions,
                attention_dim):
    """Deterministic PyTorch-style (uniform +-1/sqrt(fan_in)) init."""
    def linear(k, out_f, in_f):
        k1, k2 = jax.random.split(k)
        bound = 1.0 / np.sqrt(in_f)
        w = jax.random.uniform(k1, (out_f, in_f), jnp.float32, -bound, bound)
        b = jax.random.uniform(k2, (1, out_f), jnp.float32, -bound, bound)
        return w, b

    ks = jax.random.split(key, 5)
    wq, bq = linear(ks[0], latent_dim, rnn_hidden_dim)
    w1, b1 = linear(ks[1], nn_hidden_size, rnn_hidden_dim + latent_dim)
    w2, b2 = linear(ks[2], n_actions, nn_hidden_size)
    wk, bk = linear(ks[3], attention_dim, rnn_hidden_dim)
    wqr, bqr = linear(ks[4], attention_dim, latent_dim)
    return dict(wq=wq, bq=bq, w1=w1, b1=b1, w2=w2, b2=b2,
                wk=wk, bk=bk, wqr=wqr, bqr=bqr)


def dot_role_reference(h, al, p):
    """Pure-JAX reference mirroring the torch forward (test_mode=False)."""
    B = h.shape[0]
    A = al.shape[0]
    role_key = h @ p["wq"].T + p["bq"]                        # (B, L)
    q = role_key @ al.T                                       # (B, A)
    h_rep = jnp.broadcast_to(h[:, None, :], (B, A, h.shape[1]))
    al_rep = jnp.broadcast_to(al[None, :, :], (B, A, al.shape[1]))
    cat = jnp.concatenate([h_rep, al_rep], axis=-1)
    hid = cat @ p["w1"].T + p["b1"]
    hid = jnp.where(hid > 0, hid, LEAKY_SLOPE * hid)
    msg = hid @ p["w2"].T + p["b2"]                           # (B, A, A)
    key = h @ p["wk"].T + p["bk"]                             # (B, D)
    query = al @ p["wqr"].T + p["bqr"]                        # (A, D)
    d = key.shape[-1]
    logits = (key / jnp.sqrt(jnp.float32(d))) @ query.T       # (B, A)
    logits3 = jnp.broadcast_to(logits[:, None, :], (B, A, A))
    alpha = jax.nn.softmax(logits3, axis=-1)
    return q + jnp.sum(alpha * msg, axis=1)


if __name__ == "__main__":
    batch = 2
    rnn_hidden_dim = 32
    action_latent_dim = 16
    nn_hidden_size = 32
    n_actions = 8
    attention_dim = 16

    root = jax.random.PRNGKey(0)
    k_h, k_al, k_p, k_h2 = jax.random.split(root, 4)
    h = jax.random.normal(k_h, (batch, rnn_hidden_dim), jnp.float32)
    action_latent = jax.random.normal(
        k_al, (n_actions, action_latent_dim), jnp.float32)
    params = make_params(k_p, rnn_hidden_dim, action_latent_dim,
                         nn_hidden_size, n_actions, attention_dim)
    prep = prepare_params(params, rnn_hidden_dim)

    # Small-batch path (single full-batch block).
    out = jax.block_until_ready(dot_role_forward(h, action_latent, prep))
    ref = dot_role_reference(h, action_latent, params)
    np.testing.assert_allclose(np.asarray(out), np.asarray(ref), rtol=1e-4, atol=1e-4)

    # Larger, non-multiple-of-128 batch exercising the padded / multi-step lane-dense grid.
    big_batch = 300
    h_big = jax.random.normal(k_h2, (big_batch, rnn_hidden_dim), jnp.float32)
    out_big = jax.block_until_ready(dot_role_forward(h_big, action_latent, prep))
    ref_big = dot_role_reference(h_big, action_latent, params)
    np.testing.assert_allclose(np.asarray(out_big), np.asarray(ref_big),
                               rtol=1e-4, atol=1e-4)

    print("KERNEL_OK")
</pallas_src>

<mosaic_0001>
module attributes {stable_mosaic.version = 11 : i64} {
  func.func @dot_role_kernel(%arg0: i32, %arg1: memref<2x32xf32, #tpu.memory_space<vmem>>, %arg2: memref<8x16xf32, #tpu.memory_space<vmem>>, %arg3: memref<64x32xf32, #tpu.memory_space<vmem>>, %arg4: memref<64x1xf32, #tpu.memory_space<vmem>>, %arg5: memref<48x16xf32, #tpu.memory_space<vmem>>, %arg6: memref<48x1xf32, #tpu.memory_space<vmem>>, %arg7: memref<8x32xf32, #tpu.memory_space<vmem>>, %arg8: memref<8x1xf32, #tpu.memory_space<vmem>>, %arg9: memref<8x2xf32, #tpu.memory_space<vmem>>) attributes {dimension_semantics = [#tpu.dimension_semantics<parallel>], iteration_bounds = array<i64: 1>, scalar_prefetch = 0 : i64, scratch_operands = 0 : i64, tpu.core_type = #tpu.core_type<tc>, window_params = [{transform_indices = @transform_0, window_bounds = array<i64: 2, 32>}, {pipeline_mode = #tpu.pipeline_mode<synchronous>, transform_indices = @transform_1, window_bounds = array<i64: 8, 16>}, {pipeline_mode = #tpu.pipeline_mode<synchronous>, transform_indices = @transform_2, window_bounds = array<i64: 64, 32>}, {pipeline_mode = #tpu.pipeline_mode<synchronous>, transform_indices = @transform_3, window_bounds = array<i64: 64, 1>}, {pipeline_mode = #tpu.pipeline_mode<synchronous>, transform_indices = @transform_4, window_bounds = array<i64: 48, 16>}, {pipeline_mode = #tpu.pipeline_mode<synchronous>, transform_indices = @transform_5, window_bounds = array<i64: 48, 1>}, {pipeline_mode = #tpu.pipeline_mode<synchronous>, transform_indices = @transform_6, window_bounds = array<i64: 8, 32>}, {pipeline_mode = #tpu.pipeline_mode<synchronous>, transform_indices = @transform_7, window_bounds = array<i64: 8, 1>}, {transform_indices = @transform_8, window_bounds = array<i64: 8, 2>}]} {
    %c0 = arith.constant 0 : index
    %c0_0 = arith.constant 0 : index
    %0 = vector.load %arg1[%c0, %c0_0] : memref<2x32xf32, #tpu.memory_space<vmem>>, vector<2x32xf32>
    %c0_1 = arith.constant 0 : index
    %c0_2 = arith.constant 0 : index
    %1 = vector.load %arg2[%c0_1, %c0_2] : memref<8x16xf32, #tpu.memory_space<vmem>>, vector<8x16xf32>
    %c0_3 = arith.constant 0 : index
    %c0_4 = arith.constant 0 : index
    %2 = vector.load %arg3[%c0_3, %c0_4] : memref<64x32xf32, #tpu.memory_space<vmem>>, vector<64x32xf32>
    %cst = arith.constant dense<0.000000e+00> : vector<64x2xf32>
    %3 = tpu.matmul %2, %0, %cst {dimension_numbers = #tpu.dot_dimension_numbers<[1], [1], [0], [0], [0, 0, 1, 0], [], []>} : vector<64x32xf32>, vector<2x32xf32>, vector<64x2xf32> -> vector<64x2xf32>
    %c0_5 = arith.constant 0 : index
    %c0_6 = arith.constant 0 : index
    %4 = vector.load %arg4[%c0_5, %c0_6] : memref<64x1xf32, #tpu.memory_space<vmem>>, vector<64x1xf32>
    %5 = vector.broadcast %4 : vector<64x1xf32> to vector<64x2xf32>
    %6 = arith.addf %3, %5 : vector<64x2xf32>
    %7 = vector.extract_strided_slice %6 {offsets = [0, 0], sizes = [16, 2], strides = [1, 1]} : vector<64x2xf32> to vector<16x2xf32>
    %8 = vector.extract_strided_slice %6 {offsets = [16, 0], sizes = [32, 2], strides = [1, 1]} : vector<64x2xf32> to vector<32x2xf32>
    %9 = vector.extract_strided_slice %6 {offsets = [48, 0], sizes = [16, 2], strides = [1, 1]} : vector<64x2xf32> to vector<16x2xf32>
    %c0_7 = arith.constant 0 : index
    %c0_8 = arith.constant 0 : index
    %10 = vector.load %arg5[%c0_7, %c0_8] : memref<48x16xf32, #tpu.memory_space<vmem>>, vector<48x16xf32>
    %cst_9 = arith.constant dense<0.000000e+00> : vector<48x8xf32>
    %11 = tpu.matmul %10, %1, %cst_9 {dimension_numbers = #tpu.dot_dimension_numbers<[1], [1], [0], [0], [0, 0, 1, 0], [], []>} : vector<48x16xf32>, vector<8x16xf32>, vector<48x8xf32> -> vector<48x8xf32>
    %c0_10 = arith.constant 0 : index
    %c0_11 = arith.constant 0 : index
    %12 = vector.load %arg6[%c0_10, %c0_11] : memref<48x1xf32, #tpu.memory_space<vmem>>, vector<48x1xf32>
    %13 = vector.broadcast %12 : vector<48x1xf32> to vector<48x8xf32>
    %14 = arith.addf %11, %13 : vector<48x8xf32>
    %15 = vector.extract_strided_slice %14 {offsets = [0, 0], sizes = [32, 8], strides = [1, 1]} : vector<48x8xf32> to vector<32x8xf32>
    %16 = vector.extract_strided_slice %14 {offsets = [32, 0], sizes = [16, 8], strides = [1, 1]} : vector<48x8xf32> to vector<16x8xf32>
    %cst_12 = arith.constant dense<0.000000e+00> : vector<8x2xf32>
    %17 = tpu.matmul %1, %7, %cst_12 {dimension_numbers = #tpu.dot_dimension_numbers<[1], [0], [0], [1], [0, 0, 1, 1], [], []>} : vector<8x16xf32>, vector<16x2xf32>, vector<8x2xf32> -> vector<8x2xf32>
    %18 = vector.extract_strided_slice %15 {offsets = [0, 0], sizes = [32, 1], strides = [1, 1]} : vector<32x8xf32> to vector<32x1xf32>
    %19 = vector.broadcast %18 : vector<32x1xf32> to vector<32x2xf32>
    %20 = arith.addf %8, %19 : vector<32x2xf32>
    %cst_13 = arith.constant 0.000000e+00 : f32
    %21 = vector.broadcast %cst_13 : f32 to vector<32x2xf32>
    %22 = arith.cmpf ogt, %20, %21 : vector<32x2xf32>
    %cst_14 = arith.constant 0.00999999977 : f32
    %23 = vector.broadcast %cst_14 : f32 to vector<32x2xf32>
    %24 = arith.mulf %23, %20 : vector<32x2xf32>
    %25 = arith.select %22, %20, %24 : vector<32x2xi1>, vector<32x2xf32>
    %26 = vector.extract_strided_slice %15 {offsets = [0, 1], sizes = [32, 1], strides = [1, 1]} : vector<32x8xf32> to vector<32x1xf32>
    %27 = vector.broadcast %26 : vector<32x1xf32> to vector<32x2xf32>
    %28 = arith.addf %8, %27 : vector<32x2xf32>
    %cst_15 = arith.constant 0.000000e+00 : f32
    %29 = vector.broadcast %cst_15 : f32 to vector<32x2xf32>
    %30 = arith.cmpf ogt, %28, %29 : vector<32x2xf32>
    %cst_16 = arith.constant 0.00999999977 : f32
    %31 = vector.broadcast %cst_16 : f32 to vector<32x2xf32>
    %32 = arith.mulf %31, %28 : vector<32x2xf32>
    %33 = arith.select %30, %28, %32 : vector<32x2xi1>, vector<32x2xf32>
    %34 = arith.addf %25, %33 : vector<32x2xf32>
    %35 = vector.extract_strided_slice %15 {offsets = [0, 2], sizes = [32, 1], strides = [1, 1]} : vector<32x8xf32> to vector<32x1xf32>
    %36 = vector.broadcast %35 : vector<32x1xf32> to vector<32x2xf32>
    %37 = arith.addf %8, %36 : vector<32x2xf32>
    %cst_17 = arith.constant 0.000000e+00 : f32
    %38 = vector.broadcast %cst_17 : f32 to vector<32x2xf32>
    %39 = arith.cmpf ogt, %37, %38 : vector<32x2xf32>
    %cst_18 = arith.constant 0.00999999977 : f32
    %40 = vector.broadcast %cst_18 : f32 to vector<32x2xf32>
    %41 = arith.mulf %40, %37 : vector<32x2xf32>
    %42 = arith.select %39, %37, %41 : vector<32x2xi1>, vector<32x2xf32>
    %43 = arith.addf %34, %42 : vector<32x2xf32>
    %44 = vector.extract_strided_slice %15 {offsets = [0, 3], sizes = [32, 1], strides = [1, 1]} : vector<32x8xf32> to vector<32x1xf32>
    %45 = vector.broadcast %44 : vector<32x1xf32> to vector<32x2xf32>
    %46 = arith.addf %8, %45 : vector<32x2xf32>
    %cst_19 = arith.constant 0.000000e+00 : f32
    %47 = vector.broadcast %cst_19 : f32 to vector<32x2xf32>
    %48 = arith.cmpf ogt, %46, %47 : vector<32x2xf32>
    %cst_20 = arith.constant 0.00999999977 : f32
    %49 = vector.broadcast %cst_20 : f32 to vector<32x2xf32>
    %50 = arith.mulf %49, %46 : vector<32x2xf32>
    %51 = arith.select %48, %46, %50 : vector<32x2xi1>, vector<32x2xf32>
    %52 = arith.addf %43, %51 : vector<32x2xf32>
    %53 = vector.extract_strided_slice %15 {offsets = [0, 4], sizes = [32, 1], strides = [1, 1]} : vector<32x8xf32> to vector<32x1xf32>
    %54 = vector.broadcast %53 : vector<32x1xf32> to vector<32x2xf32>
    %55 = arith.addf %8, %54 : vector<32x2xf32>
    %cst_21 = arith.constant 0.000000e+00 : f32
    %56 = vector.broadcast %cst_21 : f32 to vector<32x2xf32>
    %57 = arith.cmpf ogt, %55, %56 : vector<32x2xf32>
    %cst_22 = arith.constant 0.00999999977 : f32
    %58 = vector.broadcast %cst_22 : f32 to vector<32x2xf32>
    %59 = arith.mulf %58, %55 : vector<32x2xf32>
    %60 = arith.select %57, %55, %59 : vector<32x2xi1>, vector<32x2xf32>
    %61 = arith.addf %52, %60 : vector<32x2xf32>
    %62 = vector.extract_strided_slice %15 {offsets = [0, 5], sizes = [32, 1], strides = [1, 1]} : vector<32x8xf32> to vector<32x1xf32>
    %63 = vector.broadcast %62 : vector<32x1xf32> to vector<32x2xf32>
    %64 = arith.addf %8, %63 : vector<32x2xf32>
    %cst_23 = arith.constant 0.000000e+00 : f32
    %65 = vector.broadcast %cst_23 : f32 to vector<32x2xf32>
    %66 = arith.cmpf ogt, %64, %65 : vector<32x2xf32>
    %cst_24 = arith.constant 0.00999999977 : f32
    %67 = vector.broadcast %cst_24 : f32 to vector<32x2xf32>
    %68 = arith.mulf %67, %64 : vector<32x2xf32>
    %69 = arith.select %66, %64, %68 : vector<32x2xi1>, vector<32x2xf32>
    %70 = arith.addf %61, %69 : vector<32x2xf32>
    %71 = vector.extract_strided_slice %15 {offsets = [0, 6], sizes = [32, 1], strides = [1, 1]} : vector<32x8xf32> to vector<32x1xf32>
    %72 = vector.broadcast %71 : vector<32x1xf32> to vector<32x2xf32>
    %73 = arith.addf %8, %72 : vector<32x2xf32>
    %cst_25 = arith.constant 0.000000e+00 : f32
    %74 = vector.broadcast %cst_25 : f32 to vector<32x2xf32>
    %75 = arith.cmpf ogt, %73, %74 : vector<32x2xf32>
    %cst_26 = arith.constant 0.00999999977 : f32
    %76 = vector.broadcast %cst_26 : f32 to vector<32x2xf32>
    %77 = arith.mulf %76, %73 : vector<32x2xf32>
    %78 = arith.select %75, %73, %77 : vector<32x2xi1>, vector<32x2xf32>
    %79 = arith.addf %70, %78 : vector<32x2xf32>
    %80 = vector.extract_strided_slice %15 {offsets = [0, 7], sizes = [32, 1], strides = [1, 1]} : vector<32x8xf32> to vector<32x1xf32>
    %81 = vector.broadcast %80 : vector<32x1xf32> to vector<32x2xf32>
    %82 = arith.addf %8, %81 : vector<32x2xf32>
    %cst_27 = arith.constant 0.000000e+00 : f32
    %83 = vector.broadcast %cst_27 : f32 to vector<32x2xf32>
    %84 = arith.cmpf ogt, %82, %83 : vector<32x2xf32>
    %cst_28 = arith.constant 0.00999999977 : f32
    %85 = vector.broadcast %cst_28 : f32 to vector<32x2xf32>
    %86 = arith.mulf %85, %82 : vector<32x2xf32>
    %87 = arith.select %84, %82, %86 : vector<32x2xi1>, vector<32x2xf32>
    %88 = arith.addf %79, %87 : vector<32x2xf32>
    %c0_29 = arith.constant 0 : index
    %c0_30 = arith.constant 0 : index
    %89 = vector.load %arg7[%c0_29, %c0_30] : memref<8x32xf32, #tpu.memory_space<vmem>>, vector<8x32xf32>
    %cst_31 = arith.constant dense<0.000000e+00> : vector<8x2xf32>
    %90 = tpu.matmul %89, %88, %cst_31 {dimension_numbers = #tpu.dot_dimension_numbers<[1], [0], [0], [1], [0, 0, 1, 1], [], []>} : vector<8x32xf32>, vector<32x2xf32>, vector<8x2xf32> -> vector<8x2xf32>
    %c0_32 = arith.constant 0 : index
    %c0_33 = arith.constant 0 : index
    %91 = vector.load %arg8[%c0_32, %c0_33] : memref<8x1xf32, #tpu.memory_space<vmem>>, vector<8x1xf32>
    %92 = vector.broadcast %91 : vector<8x1xf32> to vector<8x2xf32>
    %93 = arith.addf %90, %92 : vector<8x2xf32>
    %cst_34 = arith.constant dense<0.000000e+00> : vector<8x2xf32>
    %94 = tpu.matmul %16, %9, %cst_34 {dimension_numbers = #tpu.dot_dimension_numbers<[0], [0], [1], [1], [0, 1, 1, 1], [], []>} : vector<16x8xf32>, vector<16x2xf32>, vector<8x2xf32> -> vector<8x2xf32>
    %cst_35 = arith.constant dense<0xFF800000> : vector<2xf32>
    %95 = vector.multi_reduction <maximumf>, %94, %cst_35 [0] : vector<8x2xf32> to vector<2xf32>
    %96 = vector.shape_cast %95 : vector<2xf32> to vector<1x2xf32>
    %97 = vector.broadcast %96 : vector<1x2xf32> to vector<8x2xf32>
    %98 = arith.subf %94, %97 : vector<8x2xf32>
    %99 = math.exp %98 : vector<8x2xf32>
    %cst_36 = arith.constant dense<0.000000e+00> : vector<2xf32>
    %100 = vector.multi_reduction <add>, %99, %cst_36 [0] : vector<8x2xf32> to vector<2xf32>
    %101 = vector.shape_cast %100 : vector<2xf32> to vector<1x2xf32>
    %102 = tpu.reciprocal %101 : vector<1x2xf32> -> vector<1x2xf32>
    %103 = vector.broadcast %102 : vector<1x2xf32> to vector<8x2xf32>
    %104 = arith.mulf %99, %103 : vector<8x2xf32>
    %105 = arith.mulf %104, %93 : vector<8x2xf32>
    %106 = arith.addf %17, %105 : vector<8x2xf32>
    %c0_37 = arith.constant 0 : index
    %c0_38 = arith.constant 0 : index
    %107 = vector.load %arg9[%c0_37, %c0_38] : memref<8x2xf32, #tpu.memory_space<vmem>>, vector<8x2xf32>
    tpu.vector_store %arg9[%c0_37, %c0_38], %106 {strides = array<i32>} : memref<8x2xf32, #tpu.memory_space<vmem>>, vector<8x2xf32>,
    return
  }
  func.func @transform_0(%arg0: i32) -> (i32, i32) {
    %c0_i32 = arith.constant 0 : i32
    %c0_i32_0 = arith.constant 0 : i32
    return %arg0, %c0_i32 : i32, i32
  }
  func.func @transform_1(%arg0: i32) -> (i32, i32) {
    %c0_i32 = arith.constant 0 : i32
    %c0_i32_0 = arith.constant 0 : i32
    %c0_i32_1 = arith.constant 0 : i32
    return %c0_i32, %c0_i32_0 : i32, i32
  }
  func.func @transform_2(%arg0: i32) -> (i32, i32) {
    %c0_i32 = arith.constant 0 : i32
    %c0_i32_0 = arith.constant 0 : i32
    %c0_i32_1 = arith.constant 0 : i32
    return %c0_i32, %c0_i32_0 : i32, i32
  }
  func.func @transform_3(%arg0: i32) -> (i32, i32) {
    %c0_i32 = arith.constant 0 : i32
    %c0_i32_0 = arith.constant 0 : i32
    %c0_i32_1 = arith.constant 0 : i32
    return %c0_i32, %c0_i32_0 : i32, i32
  }
  func.func @transform_4(%arg0: i32) -> (i32, i32) {
    %c0_i32 = arith.constant 0 : i32
    %c0_i32_0 = arith.constant 0 : i32
    %c0_i32_1 = arith.constant 0 : i32
    return %c0_i32, %c0_i32_0 : i32, i32
  }
  func.func @transform_5(%arg0: i32) -> (i32, i32) {
    %c0_i32 = arith.constant 0 : i32
    %c0_i32_0 = arith.constant 0 : i32
    %c0_i32_1 = arith.constant 0 : i32
    return %c0_i32, %c0_i32_0 : i32, i32
  }
  func.func @transform_6(%arg0: i32) -> (i32, i32) {
    %c0_i32 = arith.constant 0 : i32
    %c0_i32_0 = arith.constant 0 : i32
    %c0_i32_1 = arith.constant 0 : i32
    return %c0_i32, %c0_i32_0 : i32, i32
  }
  func.func @transform_7(%arg0: i32) -> (i32, i32) {
    %c0_i32 = arith.constant 0 : i32
    %c0_i32_0 = arith.constant 0 : i32
    %c0_i32_1 = arith.constant 0 : i32
    return %c0_i32, %c0_i32_0 : i32, i32
  }
  func.func @transform_8(%arg0: i32) -> (i32, i32) {
    %c0_i32 = arith.constant 0 : i32
    %c0_i32_0 = arith.constant 0 : i32
    return %c0_i32, %arg0 : i32, i32
  }
}

</mosaic_0001>

<bundles_post_ra>
// kernel: tpu_custom_call.1
= control target key start
LH: loop header
LB: loop body
LE: loop exit
PB: predicated region body
PF: predicated region fallthrough
CT: control target
= control target key end

     0   :  { %vm87_vm0 = vcmask 261120   ;;  %vm262_vm1 = vcmask 130048   ;;  %v1089_v3 = vmov 0   ;;  %v1090_v29 = vmov 3   ;;  %s1413_s0 = inlined_call_operand.vmem [shape: f32[2,32], index: 0, kind: input, shape index: {}]   ;;  %s1414_s1 = inlined_call_operand.vmem [shape: f32[8,16], index: 1, kind: input, shape index: {}]   ;;  %s1415_s2 = inlined_call_operand.vmem [shape: f32[64,32], index: 2, kind: input, shape index: {}]   ;;  %s1416_s4 = inlined_call_operand.vmem [shape: f32[48,16], index: 4, kind: input, shape index: {}]   ;;  %s1417_s5 = inlined_call_operand.vmem [shape: f32[48,1], index: 5, kind: input, shape index: {}]   ;;  %s1418_s3 = inlined_call_operand.vmem [shape: f32[64,1], index: 3, kind: input, shape index: {}]   ;;  %s1419_s7 = inlined_call_operand.vmem [shape: f32[8,1], index: 7, kind: input, shape index: {}]   ;;  %s1420_s6 = inlined_call_operand.vmem [shape: f32[8,32], index: 6, kind: input, shape index: {}]   ;;  %s1421_s8 = inlined_call_operand.vmem [shape: f32[8,2], index: 8, kind: output, shape index: {}]  }
   0x1   :  { %v29_v0 = vld [vmem:[%s1413_s0] sm:$0x3]  ;;  %1054 = vset.pattern.permute.xlu0 %v1089_v3  ;;  %1055 = vset.pattern.permute.xlu1 %v1089_v3  ;;  %v32_v5 = vld [vmem:[%s1415_s2 + $0x8] sm:$0xff]  ;;  %v33_v7 = vld [vmem:[%s1415_s2 + $0x10] sm:$0xff]  ;;  %v1091_v30 = vmov 0.0   ;;  %v1092_v43 = vmov 5  }
   0x2   :  { %v1150_v1 = vld [vmem:[%s1414_s1] sm:$0xff]  ;;  %994 = vmatprep.subr.msk.mxu0 %vm87_vm0, %v29_v0  ;;  %v221_v6 = vld [vmem:[%s1416_s4 + $0x8] sm:$0xff]  ;;  %v222_v8 = vld [vmem:[%s1416_s4 + $0x10] sm:$0xff]  ;;  %v1093_v44 = vmov 1   ;;  %v1094_v48 = vmov 6   ;;  %v1095_v49 = vmov 2  }
   0x3   :  { %v31_v2 = vld [vmem:[%s1415_s2] sm:$0xff]  ;;  %1008 = vmatprep.subr.msk.mxu1 %vm262_vm1, %v1150_v1  ;;  %995 = vmatpush3.xpose.msk.msra.mxu0 %vm87_vm0, %v29_v0  ;;  %v34_v10 = vld [vmem:[%s1415_s2 + $0x18] sm:$0xff]  ;;  %v231_v15 = vld [vmem:[%s1417_s5 + $0x28] sm:$0xff]  ;;  %v1096_v57 = vmov 4   ;;  %v1097_v60 = vmov 7   ;;  %vm1098_vm2 = vmmov 0  }
   0x4   :  { %v220_v4 = vld [vmem:[%s1416_s4] sm:$0xff]  ;;  %1009 = vmatpush3.xpose.msk.msra.mxu1 %vm262_vm1, %v1150_v1  ;;  %996 = vmatprep.mubr.msk.f32.mxu0 %vm87_vm0, %v31_v2  ;;  %v223_v11 = vld [vmem:[%s1416_s4 + $0x18] sm:$0xff]  ;;  %v228_v16 = vld [vmem:[%s1417_s5 + $0x10] sm:$0xff] }
   0x5   :  { %1010 = vmatprep.mubr.msk.f32.mxu1 %vm262_vm1, %v220_v4  ;;  %v230_v9 = vld [vmem:[%s1417_s5 + $0x20] sm:$0xff]  ;;  %v229_v14 = vld [vmem:[%s1417_s5 + $0x18] sm:$0xff]  ;;  %v36_v17 = vld [vmem:[%s1415_s2 + $0x28] sm:$0xff]  ;;  %1030 = vmatprep.subr.mxu0 %v1091_v30 }
   0x6   :  { %997 = vmatmul.mubr.msk.f32.vlgmr.msra.gmra.mxu0 %vm87_vm0, %v32_v5  ;;  %v35_v12 = vld [vmem:[%s1415_s2 + $0x20] sm:$0xff]  ;;  %254 = vperm.xlu0 %1054, %v230_v9   ;;  %v225_v18 = vld [vmem:[%s1416_s4 + $0x28] sm:$0xff]  ;;  %v37_v19 = vld [vmem:[%s1415_s2 + $0x30] sm:$0xff] }
   0x7   :  { %1011 = vmatmul.mubr.msk.f32.vlgmr.msra.gmra.mxu1 %vm262_vm1, %v221_v6  ;;  %999 = vmatprep.mubr.msk.f32.mxu0 %vm87_vm0, %v33_v7  ;;  %v224_v13 = vld [vmem:[%s1416_s4 + $0x20] sm:$0xff]  ;;  %v227_v20 = vld [vmem:[%s1417_s5 + $0x8] sm:$0xff]  ;;  %v38_v22 = vld [vmem:[%s1415_s2 + $0x38] sm:$0xff] }
   0x8   :  { %1013 = vmatprep.mubr.msk.f32.mxu1 %vm262_vm1, %v222_v8  ;;  %249 = vperm.xlu1 %1055, %v229_v14   ;;  %v226_v21 = vld [vmem:[%s1417_s5] sm:$0xff]  ;;  %v46_v23 = vld [vmem:[%s1418_s3 + $0x38] sm:$0xff]  ;;  %v45_v24 = vld [vmem:[%s1418_s3 + $0x30] sm:$0xff] }
   0x9   :  { %v44_v25 = vld [vmem:[%s1418_s3 + $0x28] sm:$0xff]  ;;  %v41_v26 = vld [vmem:[%s1418_s3 + $0x10] sm:$0xff]  ;;  %v43_v27 = vld [vmem:[%s1418_s3 + $0x20] sm:$0xff]  ;;  %1019 = vmatprep.subr.mxu1 %v1091_v30 }
   0xa   :  { %1000 = vmatmul.mubr.msk.f32.gmra.mxu0 %vm87_vm0, %v34_v10  ;;  %259 = vperm.xlu0 %1054, %v231_v15   ;;  %v42_v28 = vld [vmem:[%s1418_s3 + $0x18] sm:$0xff]  ;;  %v40_v63 = vld [vmem:[%s1418_s3 + $0x8] sm:$0xff] }
   0xb   :  { %1014 = vmatmul.mubr.msk.f32.gmra.mxu1 %vm262_vm1, %v223_v11  ;;  %1002 = vmatprep.mubr.msk.f32.mxu0 %vm87_vm0, %v35_v12 }
   0xc   :  { %1016 = vmatprep.mubr.msk.f32.mxu1 %vm262_vm1, %v224_v13  ;;  %244 = vperm.xlu1 %1055, %v228_v16  }
   0xe   :  { %1003 = vmatmul.mubr.msk.f32.gmra.mxu0 %vm87_vm0, %v36_v17  ;;  %239 = vperm.xlu0 %1054, %v227_v20  }
   0xf   :  { %1017 = vmatmul.mubr.msk.f32.gmra.mxu1 %vm262_vm1, %v225_v18  ;;  %1005 = vmatprep.mubr.msk.f32.mxu0 %vm87_vm0, %v37_v19  ;;  %v39_v18 = vld [vmem:[%s1418_s3] sm:$0xff] }
  0x10   :  { %234 = vperm.xlu1 %1055, %v226_v21   ;;  %1027 = vmatprep.mubr.msk.f32.mxu1 %vm1098_vm2, %v1091_v30  ;;  %v668_v21 = vld [vmem:[%s1419_s7] sm:$0xff] }
  0x12   :  { %1006 = vmatmul.mubr.msk.f32.gmra.mxu0 %vm87_vm0, %v38_v22  ;;  %84 = vperm.xlu0 %1054, %v46_v23  }
  0x13   :  { %1034 = vmatprep.mubr.msk.f32.mxu0 %vm1098_vm2, %v1091_v30 }
  0x14   :  { %79 = vperm.xlu1 %1055, %v45_v24  }
  0x16   :  { %74 = vperm.xlu0 %1054, %v44_v25  }
  0x18   :  { %59 = vperm.xlu1 %1055, %v41_v26  }
  0x1a   :  { %69 = vperm.xlu0 %1054, %v43_v27  }
  0x1c   :  { %1058 = vset.pattern.permute.xlu1 %v1090_v29 }
  0x1e   :  { %64 = vperm.xlu0 %1054, %v42_v28  }
  0x81   :  { %v1255_v31 = vpop.permute.xlu0 %254 }
  0x83   :  { %v250_v33 = vpop.permute.xlu1 %249 }
  0x85   :  { %v1257_v32 = vpop.permute.xlu0 %259 }
  0x87   :  { %v1261_v37 = vpop.permute.xlu1 %244 }
  0x89   :  { %v240_v34 = vpop.permute.xlu0 %239 }
  0x8b   :  { %v235_v42 = vpop.permute.xlu1 %234 }
  0x8d   :  { %v85_v47 = vpop.permute.xlu0 %84 }
  0x8f   :  { %v80_v51 = vpop.permute.xlu1 %79 }
  0x91   :  { %v75_v4 = vpop.permute.xlu0 %74 }
  0x93   :  { %v60_v9 = vpop.permute.xlu1 %59 }
  0x95   :  { %v1308_v7 = vpop.permute.xlu0 %69 }
  0x99   :  { %v65_v8 = vpop.permute.xlu0 %64 }
  0xc6   :  { %v1259_v35 = vpop.f32.mrf.mxu0 }
  0xc7   :  { %v1012_v36 = vpop.f32.mrf.mxu1 }
  0xc8   :  { %v1263_v38 = vadd.f32 %v1012_v36, %v240_v34  ;;  %v1265_v39 = vpop.f32.mrf.mxu0 }
  0xc9   :  { %v350_v53 = vpop.f32.mrf.mxu1 }
  0xca   :  { %492 = vperm.xlu1 %1058, %v1263_v38   ;;  %386 = vperm.xlu0 %1054, %v1263_v38   ;;  %v1269_v40 = vpop.f32.mrf.mxu0  ;;  %v351_v56 = vadd.f32 %v350_v53, %v235_v42 }
  0xcb   :  { %v1015_v58 = vpop.f32.mrf.mxu1 }
  0xcc   :  { %v1271_v41 = vpop.f32.mrf.mxu0  ;;  %v366_v59 = vadd.f32 %v1015_v58, %v250_v33 }
  0xcd   :  { %v360_v61 = vpop.f32.mrf.mxu1 }
  0xce   :  { %1060 = vset.pattern.permute.xlu1 %v1092_v43  ;;  %1056 = vset.pattern.permute.xlu0 %v1093_v44  ;;  %v1276_v45 = vpop.f32.mrf.mxu0  ;;  %v361_v62 = vadd.f32 %v360_v61, %v1261_v37 }
  0xcf   :  { %564 = vperm.xlu1 %1060, %v1263_v38   ;;  %420 = vperm.xlu0 %1056, %v1263_v38   ;;  %v1018_v0 = vpop.f32.mrf.mxu1  ;;  %v207_v26 = vadd.f32 %v1276_v45, %v75_v4 }
  0xd0   :  { %v1278_v46 = vpop.f32.mrf.mxu0  ;;  %v376_v6 = vadd.f32 %v1018_v0, %v1257_v32 }
  0xd1   :  { %v370_v2 = vpop.f32.mrf.mxu1  ;;  %v1346_v0 = vadd.f32 %v1278_v46, %v1308_v7 }
  0xd2   :  { %v1007_v50 = vpop.f32.mrf.mxu0  ;;  %v371_v5 = vadd.f32 %v370_v2, %v1255_v31 }
  0xd3   :  { %1061 = vset.pattern.permute.xlu1 %v1094_v48  ;;  %1057 = vset.pattern.permute.xlu0 %v1095_v49  ;;  %v217_v52 = vadd.f32 %v1007_v50, %v85_v47 }
  0xd4   :  { %600 = vperm.xlu1 %1061, %v1263_v38   ;;  %456 = vperm.xlu0 %1057, %v1263_v38   ;;  %v211_v54 = vpop.f32.mrf.mxu0 }
  0xd5   :  { %v212_v55 = vadd.f32 %v211_v54, %v80_v51  ;;  %1031 = vmatpush3.msra.mxu0 %v217_v52  ;;  %v1337_v51 = vadd.f32 %v1269_v40, %v65_v8  ;;  %v1342_v40 = vadd.f32 %v1271_v41, %v60_v9 }
  0xd6   :  { %1032 = vmatprep.subr.mxu0 %v1091_v30 }
  0xd7   :  { %1033 = vmatpush3.msra.mxu0 %v212_v55 }
  0xd8   :  { %1062 = vset.pattern.permute.xlu1 %v1089_v3  ;;  %1059 = vset.pattern.permute.xlu0 %v1096_v57 }
  0xd9   :  { %528 = vperm.xlu0 %1059, %v1263_v38   ;;  %381 = vperm.xlu1 %1062, %v351_v56  }
  0xdd   :  { %1064 = vset.pattern.permute.xlu0 %v1095_v49  ;;  %1063 = vset.pattern.permute.xlu1 %v1093_v44 }
  0xde   :  { %452 = vperm.xlu0 %1064, %v351_v56   ;;  %416 = vperm.xlu1 %1063, %v351_v56  }
  0xe2   :  { %1067 = vset.pattern.permute.xlu0 %v1092_v43  ;;  %1065 = vset.pattern.permute.xlu1 %v1090_v29 }
  0xe3   :  { %560 = vperm.xlu0 %1067, %v351_v56   ;;  %488 = vperm.xlu1 %1065, %v351_v56  }
  0xe7   :  { %1068 = vset.pattern.permute.xlu0 %v1089_v3  ;;  %1066 = vset.pattern.permute.xlu1 %v1096_v57 }
  0xe8   :  { %396 = vperm.xlu0 %1068, %v366_v59   ;;  %524 = vperm.xlu1 %1066, %v351_v56  }
  0xec   :  { %1069 = vset.pattern.permute.xlu0 %v1093_v44  ;;  %536 = vperm.xlu1 %1066, %v366_v59  }
  0xed   :  { %428 = vperm.xlu0 %1069, %v366_v59  }
  0xf0   :  { %1072 = vset.pattern.permute.xlu1 %v1092_v43 }
  0xf1   :  { %1070 = vset.pattern.permute.xlu0 %v1095_v49  ;;  %572 = vperm.xlu1 %1072, %v366_v59  }
  0xf2   :  { %464 = vperm.xlu0 %1070, %v366_v59  }
  0xf5   :  { %1074 = vset.pattern.permute.xlu1 %v1097_v60 }
  0xf6   :  { %1071 = vset.pattern.permute.xlu0 %v1090_v29  ;;  %644 = vperm.xlu1 %1074, %v366_v59  }
  0xf7   :  { %500 = vperm.xlu0 %1071, %v366_v59  }
  0xfa   :  { %1078 = vset.pattern.permute.xlu1 %v1090_v29 }
  0xfb   :  { %1073 = vset.pattern.permute.xlu0 %v1094_v48  ;;  %496 = vperm.xlu1 %1078, %v361_v62  }
  0xfc   :  { %608 = vperm.xlu0 %1073, %v366_v59  }
  0xff   :  { %1080 = vset.pattern.permute.xlu1 %v1092_v43 }
 0x100   :  { %1075 = vset.pattern.permute.xlu0 %v1089_v3  ;;  %568 = vperm.xlu1 %1080, %v361_v62  }
 0x101   :  { %391 = vperm.xlu0 %1075, %v361_v62  }
 0x104   :  { %1082 = vset.pattern.permute.xlu1 %v1097_v60 }
 0x105   :  { %1076 = vset.pattern.permute.xlu0 %v1093_v44  ;;  %636 = vperm.xlu1 %1082, %v1263_v38  }
 0x106   :  { %424 = vperm.xlu0 %1076, %v361_v62  }
 0x109   :  { %632 = vperm.xlu1 %1082, %v351_v56  }
 0x10a   :  { %1077 = vset.pattern.permute.xlu0 %v1095_v49 }
 0x10b   :  { %460 = vperm.xlu0 %1077, %v361_v62  }
 0x10d   :  { %640 = vperm.xlu1 %1082, %v361_v62  }
 0x10f   :  { %1079 = vset.pattern.permute.xlu0 %v1096_v57 }
 0x110   :  { %532 = vperm.xlu0 %1079, %v361_v62  }
 0x114   :  { %1081 = vset.pattern.permute.xlu0 %v1094_v48 }
 0x115   :  { %604 = vperm.xlu0 %1081, %v361_v62  }
 0x119   :  { %596 = vperm.xlu0 %1081, %v351_v56  }
 0x11d   :  { %1083 = vset.pattern.permute.xlu0 %v1089_v3 }
 0x11e   :  { %54 = vperm.xlu0 %1083, %v40_v63  }
 0x136   :  { %747 = vxpose.xlu1.b32.start [1/2] (short) (narrow) %v371_v5, 8 }
 0x13a   :  { %748 = vxpose.xlu1.b32.end [2/2] (short) (narrow) %v376_v6, 8 }
 0x145   :  { %v1310_v10 = vpop.permute.xlu1 %492  ;;  %v387_v11 = vpop.permute.xlu0 %386 }
 0x146   :  { %v400_v55 = vadd.f32 %v387_v11, %v1337_v51  ;;  %v504_v4 = vadd.f32 %v1310_v10, %v1337_v51 }
 0x148   :  { %vm404_vm11 = vcmp.gt.f32.partialorder %v400_v55, 0.0  ;;  %vm508_vm13 = vcmp.gt.f32.partialorder %v504_v4, 0.0 }
 0x14a   :  { %v1312_v12 = vpop.permute.xlu1 %564  ;;  %v421_v13 = vpop.permute.xlu0 %420 }
 0x14b   :  { %v432_v61 = vadd.f32 %v421_v13, %v1337_v51  ;;  %v576_v7 = vadd.f32 %v1312_v12, %v1337_v51 }
 0x14d   :  { %v440_v41 = vmul.f32 0.01, %v432_v61  ;;  %vm436_vm12 = vcmp.gt.f32.partialorder %v432_v61, 0.0 }
 0x14f   :  { %v1314_v14 = vpop.permute.xlu1 %600  ;;  %v457_v15 = vpop.permute.xlu0 %456 }
 0x150   :  { %v468_v5 = vadd.f32 %v457_v15, %v1337_v51 }
 0x152   :  { %v476_v15 = vmul.f32 0.01, %v468_v5  ;;  %vm472_vm14 = vcmp.gt.f32.partialorder %v468_v5, 0.0 }
 0x154   :  { %v1316_v16 = vpop.permute.xlu0 %528  ;;  %v1318_v17 = vpop.permute.xlu1 %381 }
 0x155   :  { %v540_v12 = vadd.f32 %v1316_v16, %v1337_v51 }
 0x158   :  { %1084 = vset.pattern.permute.xlu1 %v1089_v3 }
 0x159   :  { %v1324_v19 = vpop.permute.xlu0 %452  ;;  %49 = vperm.xlu1 %1084, %v39_v18   ;;  %v417_v20 = vpop.permute.xlu1 %416 }
 0x15a   :  { %v431_v8 = vadd.f32 %v417_v20, %v1342_v40  ;;  %v399_v20 = vadd.f32 %v1318_v17, %v1342_v40 }
 0x15c   :  { %vm435_vm15 = vcmp.gt.f32.partialorder %v431_v8, 0.0  ;;  %v407_v17 = vmul.f32 0.01, %v399_v20 }
 0x15d   :  { %671 = vperm.xlu1 %1084, %v668_v21   ;;  %v408_v21 = vmul.f32 0.01, %v400_v55 }
 0x15e   :  { %v1329_v22 = vpop.permute.xlu0 %560  ;;  %v1331_v23 = vpop.permute.xlu1 %488 }
 0x15f   :  { %v503_v16 = vadd.f32 %v1331_v23, %v1342_v40 }
 0x163   :  { %v397_v24 = vpop.permute.xlu0 %396  ;;  %v1333_v25 = vpop.permute.xlu1 %524 }
 0x164   :  { %v402_v29 = vadd.f32 %v397_v24, %v207_v26 }
 0x166   :  { %v410_v36 = vmul.f32 0.01, %v402_v29  ;;  %vm406_vm4 = vcmp.gt.f32.partialorder %v402_v29, 0.0 }
 0x167   :  { %v537_v27 = vpop.permute.xlu1 %536 }
 0x168   :  { %v429_v3 = vpop.permute.xlu0 %428  ;;  %v542_v38 = vadd.f32 %v537_v27, %v207_v26  ;;  %v414_v47 = vsel %vm406_vm4, %v402_v29, %v410_v36  ;;  %v512_v27 = vmul.f32 0.01, %v504_v4  ;;  %v412_v29 = vsel %vm404_vm11, %v400_v55, %v408_v21 }
 0x169   :  { %v434_v28 = vadd.f32 %v429_v3, %v207_v26  ;;  %v439_v3 = vmul.f32 0.01, %v431_v8  ;;  %vm403_vm4 = vcmp.gt.f32.partialorder %v399_v20, 0.0 }
 0x16a   :  { %v550_v52 = vmul.f32 0.01, %v542_v38  ;;  %vm546_vm7 = vcmp.gt.f32.partialorder %v542_v38, 0.0 }
 0x16b   :  { %v442_v31 = vmul.f32 0.01, %v434_v28  ;;  %vm438_vm3 = vcmp.gt.f32.partialorder %v434_v28, 0.0 }
 0x16c   :  { %v573_v32 = vpop.permute.xlu1 %572  ;;  %v554_v2 = vsel %vm546_vm7, %v542_v38, %v550_v52  ;;  %v480_v38 = vsel %vm472_vm14, %v468_v5, %v476_v15  ;;  %v612_v5 = vadd.f32 %v1314_v14, %v1337_v51 }
 0x16d   :  { %v465_v33 = vpop.permute.xlu0 %464  ;;  %v446_v42 = vsel %vm438_vm3, %v434_v28, %v442_v31  ;;  %v578_v48 = vadd.f32 %v573_v32, %v207_v26  ;;  %v444_v31 = vsel %vm436_vm12, %v432_v61, %v440_v41  ;;  %vm580_vm3 = vcmp.gt.f32.partialorder %v576_v7, 0.0 }
 0x16e   :  { %v470_v34 = vadd.f32 %v465_v33, %v207_v26  ;;  %v450_v50 = vadd.f32 %v446_v42, %v414_v47  ;;  %v584_v33 = vmul.f32 0.01, %v576_v7  ;;  %v467_v42 = vadd.f32 %v1324_v19, %v1342_v40 }
 0x16f   :  { %v586_v56 = vmul.f32 0.01, %v578_v48  ;;  %vm582_vm8 = vcmp.gt.f32.partialorder %v578_v48, 0.0  ;;  %v448_v47 = vadd.f32 %v444_v31, %v412_v29  ;;  %v539_v61 = vadd.f32 %v1333_v25, %v1342_v40 }
 0x170   :  { %vm474_vm5 = vcmp.gt.f32.partialorder %v470_v34, 0.0  ;;  %v478_v37 = vmul.f32 0.01, %v470_v34  ;;  %v1369_v19 = vsel %vm580_vm3, %v576_v7, %v584_v33  ;;  %vm471_vm7 = vcmp.gt.f32.partialorder %v467_v42, 0.0 }
 0x171   :  { %v645_v43 = vpop.permute.xlu1 %644  ;;  %v590_v11 = vsel %vm582_vm8, %v578_v48, %v586_v56  ;;  %v443_v48 = vsel %vm435_vm15, %v431_v8, %v439_v3  ;;  %vm543_vm12 = vcmp.gt.f32.partialorder %v539_v61, 0.0  ;;  %v547_v14 = vmul.f32 0.01, %v539_v61 }
 0x172   :  { %v501_v44 = vpop.permute.xlu0 %500  ;;  %v482_v45 = vsel %vm474_vm5, %v470_v34, %v478_v37  ;;  %v650_v57 = vadd.f32 %v645_v43, %v207_v26  ;;  %vm616_vm14 = vcmp.gt.f32.partialorder %v612_v5, 0.0 }
 0x173   :  { %v506_v49 = vadd.f32 %v501_v44, %v207_v26  ;;  %v486_v54 = vadd.f32 %v482_v45, %v450_v50  ;;  %v516_v44 = vsel %vm508_vm13, %v504_v4, %v512_v27  ;;  %v484_v50 = vadd.f32 %v480_v38, %v448_v47 }
 0x174   :  { %v658_v13 = vmul.f32 0.01, %v650_v57  ;;  %vm654_vm10 = vcmp.gt.f32.partialorder %v650_v57, 0.0 }
 0x175   :  { %vm510_vm6 = vcmp.gt.f32.partialorder %v506_v49, 0.0  ;;  %v514_v53 = vmul.f32 0.01, %v506_v49 }
 0x176   :  { %v497_v59 = vpop.permute.xlu1 %496  ;;  %v662_v28 = vsel %vm654_vm10, %v650_v57, %v658_v13  ;;  %v475_v57 = vmul.f32 0.01, %v467_v42 }
 0x177   :  { %v518_v58 = vsel %vm510_vm6, %v506_v49, %v514_v53  ;;  %v609_v60 = vpop.permute.xlu0 %608  ;;  %v505_v45 = vadd.f32 %v497_v59, %v1346_v0  ;;  %vm544_vm6 = vcmp.gt.f32.partialorder %v540_v12, 0.0  ;;  %v548_v53 = vmul.f32 0.01, %v540_v12 }
 0x178   :  { %v522_v62 = vadd.f32 %v518_v58, %v486_v54  ;;  %v614_v63 = vadd.f32 %v609_v60, %v207_v26  ;;  %v411_v54 = vsel %vm403_vm4, %v399_v20, %v407_v17  ;;  %v511_v59 = vmul.f32 0.01, %v503_v16 }
 0x179   :  { %v447_v58 = vadd.f32 %v443_v48, %v411_v54  ;;  %vm509_vm11 = vcmp.gt.f32.partialorder %v505_v45, 0.0  ;;  %v479_v13 = vsel %vm471_vm7, %v467_v42, %v475_v57 }
 0x17a   :  { %v558_v6 = vadd.f32 %v554_v2, %v522_v62  ;;  %vm618_vm9 = vcmp.gt.f32.partialorder %v614_v63, 0.0  ;;  %v622_v18 = vmul.f32 0.01, %v614_v63  ;;  %v513_v62 = vmul.f32 0.01, %v505_v45 }
 0x17b   :  { %v569_v24 = vpop.permute.xlu1 %568  ;;  %v483_v41 = vadd.f32 %v479_v13, %v447_v58 }
 0x17c   :  { %v594_v9 = vadd.f32 %v590_v11, %v558_v6  ;;  %v392_v46 = vpop.permute.xlu0 %391  ;;  %v626_v10 = vsel %vm618_vm9, %v614_v63, %v622_v18  ;;  %vm507_vm9 = vcmp.gt.f32.partialorder %v503_v16, 0.0  ;;  %v577_v63 = vadd.f32 %v569_v24, %v1346_v0 }
 0x17d   :  { %v401_v34 = vadd.f32 %v392_v46, %v1346_v0  ;;  %v520_v6 = vadd.f32 %v516_v44, %v484_v50  ;;  %v552_v11 = vsel %vm544_vm6, %v540_v12, %v548_v53  ;;  %v575_v18 = vadd.f32 %v1329_v22, %v1342_v40 }
 0x17e   :  { %v630_v26 = vadd.f32 %v626_v10, %v594_v9  ;;  %v515_v9 = vsel %vm507_vm9, %v503_v16, %v511_v59  ;;  %v517_v10 = vsel %vm509_vm11, %v505_v45, %v513_v62  ;;  %v585_v15 = vmul.f32 0.01, %v577_v63 }
 0x17f   :  { %v409_v52 = vmul.f32 0.01, %v401_v34  ;;  %vm405_vm8 = vcmp.gt.f32.partialorder %v401_v34, 0.0  ;;  %v620_v22 = vmul.f32 0.01, %v612_v5  ;;  %vm581_vm15 = vcmp.gt.f32.partialorder %v577_v63, 0.0 }
 0x180   :  { %v666_v32 = vadd.f32 %v662_v28, %v630_v26  ;;  %v637_v36 = vpop.permute.xlu1 %636  ;;  %v556_v28 = vadd.f32 %v552_v11, %v520_v6  ;;  %vm579_vm3 = vcmp.gt.f32.partialorder %v575_v18, 0.0  ;;  %v583_v29 = vmul.f32 0.01, %v575_v18 }
 0x181   :  { %v425_v37 = vpop.permute.xlu0 %424  ;;  %v413_v2 = vsel %vm405_vm8, %v401_v34, %v409_v52  ;;  %v648_v20 = vadd.f32 %v637_v36, %v1337_v51  ;;  %v519_v33 = vadd.f32 %v515_v9, %v483_v41  ;;  %v551_v12 = vsel %vm543_vm12, %v539_v61, %v547_v14 }
 0x182   :  { %v433_v43 = vadd.f32 %v425_v37, %v1346_v0  ;;  %1020 = vmatpush3.msra.mxu1 %v666_v32  ;;  %v589_v51 = vsel %vm581_vm15, %v577_v63, %v585_v15  ;;  %v592_v44 = vadd.f32 %v1369_v19, %v556_v28  ;;  %v667_v63 = vld [vmem:[%s1420_s6] sm:$0xff] }
 0x183   :  { %1021 = vmatprep.subr.mxu1 %v1091_v30  ;;  %vm652_vm4 = vcmp.gt.f32.partialorder %v648_v20, 0.0  ;;  %v656_v36 = vmul.f32 0.01, %v648_v20  ;;  %v555_v47 = vadd.f32 %v551_v12, %v519_v33 }
 0x184   :  { %vm437_vm5 = vcmp.gt.f32.partialorder %v433_v43, 0.0  ;;  %v441_v49 = vmul.f32 0.01, %v433_v43  ;;  %v633_v55 = vpop.permute.xlu1 %632 }
 0x185   :  { %v647_v38 = vadd.f32 %v633_v55, %v1342_v40  ;;  %v660_v50 = vsel %vm652_vm4, %v648_v20, %v656_v36 }
 0x186   :  { %v461_v56 = vpop.permute.xlu0 %460  ;;  %v445_v60 = vsel %vm437_vm5, %v433_v43, %v441_v49  ;;  %v624_v49 = vsel %vm616_vm14, %v612_v5, %v620_v22 }
 0x187   :  { %v469_v23 = vadd.f32 %v461_v56, %v1346_v0  ;;  %v449_v8 = vadd.f32 %v445_v60, %v413_v2  ;;  %v655_v53 = vmul.f32 0.01, %v647_v38  ;;  %v628_v56 = vadd.f32 %v624_v49, %v592_v44 }
 0x188   :  { %v641_v46 = vpop.permute.xlu1 %640  ;;  %vm651_vm8 = vcmp.gt.f32.partialorder %v647_v38, 0.0 }
 0x189   :  { %vm473_vm10 = vcmp.gt.f32.partialorder %v469_v23, 0.0  ;;  %v477_v4 = vmul.f32 0.01, %v469_v23  ;;  %v649_v3 = vadd.f32 %v641_v46, %v1346_v0 }
 0x18b   :  { %v481_v25 = vsel %vm473_vm10, %v469_v23, %v477_v4  ;;  %v533_v21 = vpop.permute.xlu0 %532  ;;  %v657_v17 = vmul.f32 0.01, %v649_v3  ;;  %vm653_vm6 = vcmp.gt.f32.partialorder %v649_v3, 0.0  ;;  %v664_v23 = vadd.f32 %v660_v50, %v628_v56 }
 0x18c   :  { %v485_v24 = vadd.f32 %v481_v25, %v449_v8  ;;  %v541_v7 = vadd.f32 %v533_v21, %v1346_v0 }
 0x18d   :  { %v661_v54 = vsel %vm653_vm6, %v649_v3, %v657_v17 }
 0x18e   :  { %v521_v26 = vadd.f32 %v517_v10, %v485_v24  ;;  %vm545_vm13 = vcmp.gt.f32.partialorder %v541_v7, 0.0  ;;  %v549_v27 = vmul.f32 0.01, %v541_v7 }
 0x190   :  { %v553_v31 = vsel %vm545_vm13, %v541_v7, %v549_v27  ;;  %v605_v32 = vpop.permute.xlu0 %604 }
 0x191   :  { %v557_v34 = vadd.f32 %v553_v31, %v521_v26  ;;  %v613_v37 = vadd.f32 %v605_v32, %v1346_v0  ;;  %v587_v0 = vsel %vm579_vm3, %v575_v18, %v583_v29 }
 0x192   :  { %v591_v57 = vadd.f32 %v587_v0, %v555_v47 }
 0x193   :  { %v593_v42 = vadd.f32 %v589_v51, %v557_v34  ;;  %vm617_vm5 = vcmp.gt.f32.partialorder %v613_v37, 0.0  ;;  %v621_v43 = vmul.f32 0.01, %v613_v37 }
 0x194   :  { %v597_v48 = vpop.permute.xlu0 %596 }
 0x195   :  { %v625_v16 = vsel %vm617_vm5, %v613_v37, %v621_v43  ;;  %v611_v45 = vadd.f32 %v597_v48, %v1342_v40  ;;  %v659_v40 = vsel %vm651_vm8, %v647_v38, %v655_v53 }
 0x196   :  { %v629_v52 = vadd.f32 %v625_v16, %v593_v42 }
 0x197   :  { %vm615_vm7 = vcmp.gt.f32.partialorder %v611_v45, 0.0  ;;  %v619_v55 = vmul.f32 0.01, %v611_v45 }
 0x198   :  { %v665_v19 = vadd.f32 %v661_v54, %v629_v52 }
 0x199   :  { %v623_v58 = vsel %vm615_vm7, %v611_v45, %v619_v55  ;;  %v55_v60 = vpop.permute.xlu0 %54 }
 0x19a   :  { %v627_v59 = vadd.f32 %v623_v58, %v591_v57  ;;  %1022 = vmatpush3.msra.mxu1 %v665_v19  ;;  %v187_v61 = vadd.f32 %v1259_v35, %v55_v60 }
 0x19b   :  { %1023 = vmatprep.subr.mxu1 %v1091_v30 }
 0x19c   :  { %1024 = vmatpush3.msra.mxu1 %v664_v23  ;;  %v663_v62 = vadd.f32 %v659_v40, %v627_v59 }
 0x19d   :  { %1025 = vmatprep.subr.mxu1 %v1091_v30 }
 0x19e   :  { %1026 = vmatpush3.msra.mxu1 %v663_v62 }
 0x19f   :  { %1028 = vmatmul.mubr.msk.f32.vlgmr.msra.gmra.mxu1 %vm87_vm0, %v667_v63  ;;  %1037 = vmatprep.subr.mxu1 %v1091_v30  ;;  %vm852_vm0 = vcmask 15360  }
 0x1a0   :  { %1038 = vmatpush3.msra.mxu1 %v187_v61  ;;  %1041 = vmatprep.mubr.msk.f32.mxu1 %vm1098_vm2, %v1091_v30 }
 0x1a1   :  { %1039 = vmatprep.subr.mxu1 %v1091_v30 }
 0x1b2   :  { %v763_v35 = vpop.trf.xlu1 }
 0x1b3   :  { %1035 = vmatmul.mubr.msk.f32.vlgmr.msra.gmra.mxu0 %vm262_vm1, %v763_v35 }
 0x1d4   :  { %v50_v2 = vpop.permute.xlu1 %49 }
 0x1d5   :  { %v182_v4 = vadd.f32 %v1265_v39, %v50_v2 }
 0x1d7   :  { %1040 = vmatpush3.msra.mxu1 %v182_v4 }
 0x1d8   :  { %1042 = vmatmul.mubr.msk.f32.vlgmr.msra.gmra.mxu1 %vm262_vm1, %v1150_v1  ;;  %v672_v28 = vpop.permute.xlu1 %671 }
 0x25f   :  { %v743_v5 = vpop.f32.mrf.mxu1 }
 0x260   :  { %v744_v29 = vadd.f32 %v743_v5, %v672_v28 }
 0x261   :  { %v1029_v6 = vpop.f32.mrf.mxu1 }
 0x273   :  { %v848_v8 = vpop.f32.mrf.mxu0 }
 0x274   :  { %v853_v11 = vsel %vm852_vm0, %v848_v8, -inf }
 0x275   :  { %v854_v13 = vrot.slane %v853_v11, 4  ;;  %v1036_v18 = vpop.f32.mrf.mxu0 }
 0x277   :  { %v855_v25 = vmax.f32 %v853_v11, %v854_v13 }
 0x279   :  { %v856_v30 = vrot.slane %v855_v25, 2 }
 0x27b   :  { %v857_v21 = vmax.f32 %v855_v25, %v856_v30 }
 0x27d   :  { %v858_v41 = vrot.slane %v857_v21, 1 }
 0x27f   :  { %v859_v9 = vmax.f32 %v857_v21, %v858_v41 }
 0x281   :  { %v860_v24 = vsub.f32 %v848_v8, %v859_v9 }
 0x283   :  { %v861_v46 = vmul.f32 1.442695, %v860_v24 }
 0x285   :  { %1085 = vpow2.f32 %v861_v46 }
 0x292   :  { %v1086_v39 = vpop.eup %1085 }
 0x293   :  { %v863_v7 = vsel %vm852_vm0, %v1086_v39, 0.0 }
 0x294   :  { %v864_v1 = vrot.slane %v863_v7, 4 }
 0x296   :  { %v865_v14 = vadd.f32 %v864_v1, %v863_v7 }
 0x298   :  { %v866_v10 = vrot.slane %v865_v14, 2  ;;  %v939_v15 = vpop.f32.mrf.mxu1 }
 0x29a   :  { %v867_v20 = vadd.f32 %v866_v10, %v865_v14  ;;  %v1043_v26 = vpop.f32.mrf.mxu1 }
 0x29c   :  { %v868_v27 = vrot.slane %v867_v20, 1 }
 0x29e   :  { %v869_v22 = vadd.f32 %v868_v27, %v867_v20 }
 0x2a0   :  { %1087 = vrcp.f32 %v869_v22 }
 0x2ad   :  { %v1088_v3 = vpop.eup %1087 }
 0x2ae   :  { %v871_v31 = vmul.f32 %v1088_v3, %v1086_v39 }
 0x2b0   :  { %v872_v32 = vmul.f32 %v871_v31, %v744_v29 }
 0x2b2   :  { %v940_v33 = vadd.f32 %v939_v15, %v872_v32 }
 0x2b4   :  { %943 = vst.msk [vmem:[%s1421_s8] sm:$0xff] %vm852_vm0, %v940_v33 }

</bundles_post_ra>
